<compile_context>
chip_gen: v7x
topology: tpu7x:2x2x1
jax: 0.10.0
libtpu: 0.0.40
codegen_flags: <defaults>
</compile_context>

<pallas_src>
import functools

import jax
import jax.numpy as jnp
from jax import lax
from jax.experimental import pallas as pl
from jax.experimental.pallas import tpu as pltpu
import numpy as np

EPS = 1e-5


def _cln_kernel(x_ref, tri_ref, gb_ref, out_ref, carry_ref, *, eps):
    # x_ref/out_ref: (Bb, C, Tb)   tri_ref: (Tb, Tb)   gb_ref: (2, C, 1)
    # carry_ref: (2*Bb, 1) f32 VMEM scratch carrying [cum_sum; cum_pow] totals
    t_blk_idx = pl.program_id(1)

    @pl.when(t_blk_idx == 0)
    def _():
        carry_ref[...] = jnp.zeros_like(carry_ref)

    x = x_ref[...].astype(jnp.float32)                     # (Bb, C, Tb)
    Bb, C, Tb = x.shape

    # Per-timestep channel sums / sums of squares, stacked so both running
    # statistics ride a single MXU pass against the resident triangular matrix.
    s = jnp.sum(x, axis=1)                                 # (Bb, Tb)
    sq = jnp.sum(x * x, axis=1)                            # (Bb, Tb)
    stats = jnp.concatenate([s, sq], axis=0)               # (2*Bb, Tb)

    # Within-block cumulative sums along T (one matmul), plus carry from
    # previous T blocks.
    cum = jnp.dot(stats, tri_ref[...], preferred_element_type=jnp.float32)
    cum = cum + carry_ref[...]                             # (2*Bb, Tb)

    # Carry this block's totals forward for the next T block.
    carry_ref[...] = carry_ref[...] + jnp.sum(stats, axis=1, keepdims=True)

    cum_sum = cum[:Bb][:, None, :]                         # (Bb, 1, Tb)
    cum_pow = cum[Bb:][:, None, :]                         # (Bb, 1, Tb)

    # entry_cnt = C * (global_t + 1): exact int32, then one reciprocal.
    local_t = lax.broadcasted_iota(jnp.int32, (1, 1, Tb), 2)
    cnt = (t_blk_idx * Tb + local_t + 1) * C
    inv_cnt = 1.0 / cnt.astype(jnp.float32)

    cum_mean = cum_sum * inv_cnt
    cum_var = (cum_pow - 2.0 * cum_mean * cum_sum) * inv_cnt + cum_mean * cum_mean
    inv_std = lax.rsqrt(cum_var + eps)                     # EUP slot

    gain = gb_ref[0]                                       # (C, 1)
    bias = gb_ref[1]                                       # (C, 1)
    y = (x - cum_mean) * inv_std                           # (1,Tb) stats bcast over C
    y = y * gain[None] + bias[None]                        # (C,1) affine bcast over T
    out_ref[...] = y.astype(out_ref.dtype)


def _pick_t_block(T: int) -> int:
    """Largest lane-friendly divisor of T (<=512); else fall back to full T."""
    for cand in (512, 384, 256, 128):
        if T % cand == 0:
            return cand
    return T  # awkward / small T: full extent is always a legal block shape


def _pick_b_block(B: int, per_sample_bytes: int) -> int:
    """Amortize per-step overhead for tiny samples; keep >=2 parallel steps."""
    if B <= 1:
        return 1
    cap = min(B // 2, max(1, (512 * 1024) // max(per_sample_bytes, 1)))
    cap = max(cap, 1)
    best = 1
    for d in range(1, cap + 1):
        if B % d == 0:
            best = d
    return best


def cumulative_layer_norm_1d(x, gain, bias, *, eps=EPS):
    """x: (B, C, T); gain, bias: (1, C, 1) (PyTorch parameter layout)."""
    B, C, T = x.shape
    t_blk = _pick_t_block(T)
    b_blk = _pick_b_block(B, C * t_blk * x.dtype.itemsize)
    grid = (B // b_blk, T // t_blk)

    # Constants: triangular ones matrix (resident across the whole grid) and
    # packed gain/bias.
    tri = jnp.triu(jnp.ones((t_blk, t_blk), jnp.float32))       # tri[u,t]=1 iff u<=t
    gb = jnp.concatenate(
        [gain.reshape(1, C, 1), bias.reshape(1, C, 1)], axis=0
    ).astype(jnp.float32)                                        # (2, C, 1)

    # VMEM budget: double-buffered in/out blocks + resident tri + f32 temporaries.
    blk_in = b_blk * C * t_blk * x.dtype.itemsize
    blk_f32 = b_blk * C * t_blk * 4
    est = 4 * blk_in + 4 * blk_f32 + 2 * t_blk * t_blk * 4 + (1 << 20)
    vmem_limit = int(min(max(est, 32 << 20), 56 << 20))          # < 64 MiB (v7x)

    kernel = functools.partial(_cln_kernel, eps=eps)
    return pl.pallas_call(
        kernel,
        out_shape=jax.ShapeDtypeStruct((B, C, T), x.dtype),
        grid_spec=pltpu.PrefetchScalarGridSpec(
            num_scalar_prefetch=0,
            grid=grid,
            in_specs=[
                pl.BlockSpec((b_blk, C, t_blk), lambda b, t: (b, 0, t)),
                pl.BlockSpec((t_blk, t_blk), lambda b, t: (0, 0)),      # constant
                pl.BlockSpec((2, C, 1), lambda b, t: (0, 0, 0)),        # constant
            ],
            out_specs=pl.BlockSpec((b_blk, C, t_blk), lambda b, t: (b, 0, t)),
            scratch_shapes=[pltpu.VMEM((2 * b_blk, 1), jnp.float32)],
        ),
        compiler_params=pltpu.CompilerParams(
            dimension_semantics=("parallel", "arbitrary"),
            vmem_limit_bytes=vmem_limit,
        ),
    )(x, tri, gb)


def reference(x, gain, bias, eps=EPS):
    """Pure-JAX mirror of the PyTorch CumulativeLayerNorm1d forward."""
    B, C, T = x.shape
    cum_sum = jnp.cumsum(jnp.sum(x, axis=1), axis=1)              # (B, T)
    cum_pow = jnp.cumsum(jnp.sum(x * x, axis=1), axis=1)          # (B, T)
    cnt = jnp.arange(C, C * (T + 1), C, dtype=x.dtype).reshape(1, T)
    cum_mean = cum_sum / cnt
    cum_var = (cum_pow - 2.0 * cum_mean * cum_sum) / cnt + cum_mean ** 2
    cum_std = jnp.sqrt(cum_var + eps)
    xn = (x - cum_mean[:, None, :]) / cum_std[:, None, :]
    return xn * gain.reshape(1, C, 1) + bias.reshape(1, C, 1)


if __name__ == "__main__":
    key = jax.random.PRNGKey(0)
    B, C, T = 2, 4, 128

    k_x, k_g, k_b = jax.random.split(key, 3)
    x = jax.random.normal(k_x, (B, C, T), jnp.float32)
    # affine=True parameters (module init is ones/zeros; randomize slightly to
    # exercise the broadcast paths)
    gain = 1.0 + 0.1 * jax.random.normal(k_g, (1, C, 1), jnp.float32)
    bias = 0.1 * jax.random.normal(k_b, (1, C, 1), jnp.float32)

    out = jax.jit(cumulative_layer_norm_1d)(x, gain, bias)
    out = jax.block_until_ready(out)

    ref = reference(x, gain, bias)
    np.testing.assert_allclose(np.asarray(out), np.asarray(ref), atol=1e-4, rtol=1e-4)

    print("KERNEL_OK")
</pallas_src>

<mosaic_0001>
module attributes {stable_mosaic.version = 11 : i64} {
  func.func @_cln_kernel(%arg0: i32, %arg1: i32, %arg2: memref<1x4x128xf32, #tpu.memory_space<vmem>>, %arg3: memref<128x128xf32, #tpu.memory_space<vmem>>, %arg4: memref<2x4x1xf32, #tpu.memory_space<vmem>>, %arg5: memref<1x4x128xf32, #tpu.memory_space<vmem>>, %arg6: memref<2x1xf32, #tpu.memory_space<vmem>>) attributes {dimension_semantics = [#tpu.dimension_semantics<parallel>, #tpu.dimension_semantics<arbitrary>], iteration_bounds = array<i64: 2, 1>, scalar_prefetch = 0 : i64, scratch_operands = 1 : i64, tpu.core_type = #tpu.core_type<tc>, window_params = [{transform_indices = @transform_0, window_bounds = array<i64: 1, 4, 128>}, {pipeline_mode = #tpu.pipeline_mode<synchronous>, transform_indices = @transform_1, window_bounds = array<i64: 128, 128>}, {pipeline_mode = #tpu.pipeline_mode<synchronous>, transform_indices = @transform_2, window_bounds = array<i64: 2, 4, 1>}, {transform_indices = @transform_3, window_bounds = array<i64: 1, 4, 128>}]} {
    %c0_i32 = arith.constant 0 : i32
    %0 = arith.cmpi eq, %arg1, %c0_i32 : i32
    %1 = arith.extui %0 : i1 to i32
    %c0_i32_0 = arith.constant 0 : i32
    %2 = arith.cmpi ne, %1, %c0_i32_0 : i32
    scf.if %2 {
      %cst_25 = arith.constant 0.000000e+00 : f32
      %59 = vector.broadcast %cst_25 : f32 to vector<2x1xf32>
      %c0_26 = arith.constant 0 : index
      %c0_27 = arith.constant 0 : index
      %60 = vector.load %arg6[%c0_26, %c0_27] : memref<2x1xf32, #tpu.memory_space<vmem>>, vector<2x1xf32>
      tpu.vector_store %arg6[%c0_26, %c0_27], %59 {strides = array<i32>} : memref<2x1xf32, #tpu.memory_space<vmem>>, vector<2x1xf32>,
    } else {
    }
    %c0 = arith.constant 0 : index
    %c0_1 = arith.constant 0 : index
    %c0_2 = arith.constant 0 : index
    %3 = vector.load %arg2[%c0, %c0_1, %c0_2] : memref<1x4x128xf32, #tpu.memory_space<vmem>>, vector<1x4x128xf32>
    %cst = arith.constant dense<0.000000e+00> : vector<1x128xf32>
    %4 = vector.multi_reduction <add>, %3, %cst [1] : vector<1x4x128xf32> to vector<1x128xf32>
    %5 = arith.mulf %3, %3 : vector<1x4x128xf32>
    %cst_3 = arith.constant dense<0.000000e+00> : vector<1x128xf32>
    %6 = vector.multi_reduction <add>, %5, %cst_3 [1] : vector<1x4x128xf32> to vector<1x128xf32>
    %7 = tpu.concatenate %4, %6 in 0 : vector<1x128xf32>, vector<1x128xf32> -> vector<2x128xf32>
    %c0_4 = arith.constant 0 : index
    %c0_5 = arith.constant 0 : index
    %8 = vector.load %arg3[%c0_4, %c0_5] : memref<128x128xf32, #tpu.memory_space<vmem>>, vector<128x128xf32>
    %cst_6 = arith.constant dense<0.000000e+00> : vector<2x128xf32>
    %9 = tpu.matmul %7, %8, %cst_6 {dimension_numbers = #tpu.dot_dimension_numbers<[1], [0], [0], [1], [0, 0, 1, 1], [], []>} : vector<2x128xf32>, vector<128x128xf32>, vector<2x128xf32> -> vector<2x128xf32>
    %c0_7 = arith.constant 0 : index
    %c0_8 = arith.constant 0 : index
    %10 = vector.load %arg6[%c0_7, %c0_8] : memref<2x1xf32, #tpu.memory_space<vmem>>, vector<2x1xf32>
    %11 = vector.broadcast %10 : vector<2x1xf32> to vector<2x128xf32>
    %12 = arith.addf %9, %11 : vector<2x128xf32>
    %c0_9 = arith.constant 0 : index
    %c0_10 = arith.constant 0 : index
    %13 = vector.load %arg6[%c0_9, %c0_10] : memref<2x1xf32, #tpu.memory_space<vmem>>, vector<2x1xf32>
    %cst_11 = arith.constant dense<0.000000e+00> : vector<2xf32>
    %14 = vector.multi_reduction <add>, %7, %cst_11 [1] : vector<2x128xf32> to vector<2xf32>
    %15 = vector.shape_cast %14 : vector<2xf32> to vector<2x1xf32>
    %16 = arith.addf %13, %15 : vector<2x1xf32>
    %c0_12 = arith.constant 0 : index
    %c0_13 = arith.constant 0 : index
    %17 = vector.load %arg6[%c0_12, %c0_13] : memref<2x1xf32, #tpu.memory_space<vmem>>, vector<2x1xf32>
    tpu.vector_store %arg6[%c0_12, %c0_13], %16 {strides = array<i32>} : memref<2x1xf32, #tpu.memory_space<vmem>>, vector<2x1xf32>,
    %18 = vector.extract_strided_slice %12 {offsets = [0, 0], sizes = [1, 128], strides = [1, 1]} : vector<2x128xf32> to vector<1x128xf32>
    %19 = vector.shape_cast %18 : vector<1x128xf32> to vector<1x1x128xf32>
    %20 = vector.extract_strided_slice %12 {offsets = [1, 0], sizes = [1, 128], strides = [1, 1]} : vector<2x128xf32> to vector<1x128xf32>
    %21 = vector.shape_cast %20 : vector<1x128xf32> to vector<1x1x128xf32>
    %22 = tpu.iota {dimensions = array<i32: 2>} : vector<1x1x128xi32>
    %c128_i32 = arith.constant 128 : i32
    %23 = arith.muli %arg1, %c128_i32 : i32
    %24 = vector.broadcast %23 : i32 to vector<1x1x128xi32>
    %25 = arith.addi %24, %22 : vector<1x1x128xi32>
    %c1_i32 = arith.constant 1 : i32
    %26 = vector.broadcast %c1_i32 : i32 to vector<1x1x128xi32>
    %27 = arith.addi %25, %26 : vector<1x1x128xi32>
    %c4_i32 = arith.constant 4 : i32
    %28 = vector.broadcast %c4_i32 : i32 to vector<1x1x128xi32>
    %29 = arith.muli %27, %28 : vector<1x1x128xi32>
    %30 = arith.sitofp %29 : vector<1x1x128xi32> to vector<1x1x128xf32>
    %cst_14 = arith.constant 1.000000e+00 : f32
    %31 = vector.broadcast %cst_14 : f32 to vector<1x1x128xf32>
    %32 = arith.divf %31, %30 : vector<1x1x128xf32>
    %33 = arith.mulf %19, %32 : vector<1x1x128xf32>
    %cst_15 = arith.constant 2.000000e+00 : f32
    %34 = vector.broadcast %cst_15 : f32 to vector<1x1x128xf32>
    %35 = arith.mulf %34, %33 : vector<1x1x128xf32>
    %36 = arith.mulf %35, %19 : vector<1x1x128xf32>
    %37 = arith.subf %21, %36 : vector<1x1x128xf32>
    %38 = arith.mulf %37, %32 : vector<1x1x128xf32>
    %39 = arith.mulf %33, %33 : vector<1x1x128xf32>
    %40 = arith.addf %38, %39 : vector<1x1x128xf32>
    %cst_16 = arith.constant 9.99999974E-6 : f32
    %41 = vector.broadcast %cst_16 : f32 to vector<1x1x128xf32>
    %42 = arith.addf %40, %41 : vector<1x1x128xf32>
    %43 = math.rsqrt %42 : vector<1x1x128xf32>
    %c0_17 = arith.constant 0 : index
    %c0_18 = arith.constant 0 : index
    %c0_19 = arith.constant 0 : index
    %44 = vector.load %arg4[%c0_17, %c0_18, %c0_19] : memref<2x4x1xf32, #tpu.memory_space<vmem>>, vector<1x4x1xf32>
    %45 = vector.shape_cast %44 : vector<1x4x1xf32> to vector<4x1xf32>
    %c1 = arith.constant 1 : index
    %c0_20 = arith.constant 0 : index
    %c0_21 = arith.constant 0 : index
    %46 = vector.load %arg4[%c1, %c0_20, %c0_21] : memref<2x4x1xf32, #tpu.memory_space<vmem>>, vector<1x4x1xf32>
    %47 = vector.shape_cast %46 : vector<1x4x1xf32> to vector<4x1xf32>
    %48 = vector.broadcast %33 : vector<1x1x128xf32> to vector<1x4x128xf32>
    %49 = arith.subf %3, %48 : vector<1x4x128xf32>
    %50 = vector.broadcast %43 : vector<1x1x128xf32> to vector<1x4x128xf32>
    %51 = arith.mulf %49, %50 : vector<1x4x128xf32>
    %52 = vector.shape_cast %45 : vector<4x1xf32> to vector<1x4x1xf32>
    %53 = vector.broadcast %52 : vector<1x4x1xf32> to vector<1x4x128xf32>
    %54 = arith.mulf %51, %53 : vector<1x4x128xf32>
    %55 = vector.shape_cast %47 : vector<4x1xf32> to vector<1x4x1xf32>
    %56 = vector.broadcast %55 : vector<1x4x1xf32> to vector<1x4x128xf32>
    %57 = arith.addf %54, %56 : vector<1x4x128xf32>
    %c0_22 = arith.constant 0 : index
    %c0_23 = arith.constant 0 : index
    %c0_24 = arith.constant 0 : index
    %58 = vector.load %arg5[%c0_22, %c0_23, %c0_24] : memref<1x4x128xf32, #tpu.memory_space<vmem>>, vector<1x4x128xf32>
    tpu.vector_store %arg5[%c0_22, %c0_23, %c0_24], %57 {strides = array<i32>} : memref<1x4x128xf32, #tpu.memory_space<vmem>>, vector<1x4x128xf32>,
    return
  }
  func.func @transform_0(%arg0: i32, %arg1: i32) -> (i32, i32, i32) {
    %c0_i32 = arith.constant 0 : i32
    %c0_i32_0 = arith.constant 0 : i32
    return %arg0, %c0_i32, %arg1 : i32, i32, i32
  }
  func.func @transform_1(%arg0: i32, %arg1: i32) -> (i32, i32) {
    %c0_i32 = arith.constant 0 : i32
    %c0_i32_0 = arith.constant 0 : i32
    %c0_i32_1 = arith.constant 0 : i32
    return %c0_i32, %c0_i32_0 : i32, i32
  }
  func.func @transform_2(%arg0: i32, %arg1: i32) -> (i32, i32, i32) {
    %c0_i32 = arith.constant 0 : i32
    %c0_i32_0 = arith.constant 0 : i32
    %c0_i32_1 = arith.constant 0 : i32
    %c0_i32_2 = arith.constant 0 : i32
    return %c0_i32, %c0_i32_0, %c0_i32_1 : i32, i32, i32
  }
  func.func @transform_3(%arg0: i32, %arg1: i32) -> (i32, i32, i32) {
    %c0_i32 = arith.constant 0 : i32
    %c0_i32_0 = arith.constant 0 : i32
    return %arg0, %c0_i32, %arg1 : i32, i32, i32
  }
}

</mosaic_0001>

<bundles_post_ra>
// kernel: cumulative_layer_norm_1d.1
= control target key start
LH: loop header
LB: loop body
LE: loop exit
PB: predicated region body
PF: predicated region fallthrough
CT: control target
= control target key end

     0   :  { %8 = vsyncpa [#allocation4], 0  ;;  %s894_s0 = inlined_call_operand.vmem [shape: f32[2,4,128], index: 0, kind: input, shape index: {}]   ;;  %s895_s1 = inlined_call_operand.vmem [shape: f32[128,128], index: 1, kind: input, shape index: {}]   ;;  %s896_s2 = inlined_call_operand.vmem [shape: f32[2,4,1], index: 2, kind: input, shape index: {}]   ;;  %s897_s3 = inlined_call_operand.hbm [shape: f32[2,4,128], index: 3, kind: output, shape index: {}]  }
   0x1   :  { %10 = vsyncpa [#allocation4 + $0x1], 0  ;;  %s710_s12 = smov 0   ;;  %s712_s13 = smov 0  }
   0x2   :  { %s714_s14 = smov 0   ;;  %s716_s15 = smov 0  }
   0x3   :  { %s718_s16 = smov 0   ;;  %s720_s17 = smov 0  }
   0x4 LB: > { %s452_s18 = sadd.s32 4294967295, %s683_s17   ;;  %s453_s19 = sadd.s32 4294967294, %s683_s17   ;;  %s683_s17 = sphi %s720_s17, %s16_s17   ;;  %s679_s16 = sphi %s718_s16, %s904_s16   ;;  %s675_s15 = sphi %s716_s15, %s903_s15   ;;  %s671_s14 = sphi %s714_s14, %s902_s14   ;;  %s667_s13 = sphi %s712_s13, %s901_s13   ;;  %s663_s12 = sphi %s710_s12, %s900_s12  }
   0x5   : > { %s28_s20 = sadd.s32 1, %s679_s16  ;;  %s107_s21 = sadd.s32 1, %s671_s14 }
   0x6   : > { %p30_p0 = scmp.ge.s32.totalorder %s28_s20, 2  ;;  %p117_p1 = scmp.ne.s32.totalorder %s671_s14, %s667_s13 }
   0x7   : > { %p118_p2 = scmp.eq.s32.totalorder %s452_s18, 1  ;;  %p123_p3 = scmp.ne.s32.totalorder %s667_s13, %s663_s12 }
   0x8   : > { %s906_s20 = smov (%p30_p0, %s28_s20), 0  ;;  %p124_p5 = scmp.eq.s32.totalorder %s453_s19, 1 }
   0x9   : > { %p750_p4 = por %p118_p2, %p117_p1  ;;  %s102_s23 = ssub.s32 %s679_s16, %s906_s20 }
   0xa   : > { %p456_p6 = scmp.ge.s32.totalorder %s683_s17, 1  ;;  %p105_p7 = scmp.eq.s32.totalorder %s102_s23, 0 }
   0xb   : > { %p757_p8 = por %p124_p5, %p123_p3  ;;  %p158_p9 = scmp.lt.s32.totalorder %s683_s17, 3 }
   0xc   : > { %s763_s25 = scalar_select %p105_p7, %s671_s14, %s107_s21  }
   0xd   : > { %p159_p10 = pnand %p456_p6, %p158_p9 }
   0xe   : > { %v216_v0 = vld [vmem:[%s895_s1] sm:$0xff] (!%p159_p10)  ;;  %v217_v1 = vld [vmem:[%s895_s1 + $0x8] sm:$0xff] (!%p159_p10)  ;;  %v218_v2 = vld [vmem:[%s895_s1 + $0x10] sm:$0xff] (!%p159_p10)  ;;  %vm195_vm0 = vcmask (!%p159_p10), 1024   ;;  %v685_v3 = vmov (!%p159_p10), 0.0|0.0   ;;  %v686_v6 = vmov (!%p159_p10), 0.0   ;;  %v315_v51 = vlaneseq (!%p159_p10) }
   0xf   : > { %162 = sbr.rel (%p159_p10) target bundleno = 311 (0x137), region = 32  ;;  %516 = vmatprep.subr.bf16.mxu0 (!%p159_p10), %v685_v3  ;;  %v517_v4 = vpack.c.bf16 (!%p159_p10), %v217_v1, %v216_v0  ;;  %v219_v5 = vld [vmem:[%s895_s1 + $0x18] sm:$0xff] (!%p159_p10)  ;;  %196 = vst.msk [vmem:[#allocation2] sm:$0x3] (!%p159_p10), %vm195_vm0, %v686_v6  ;;  %p184_p11 = scmp.lt.s32.totalorder (!%p159_p10), %s675_s15, 1  ;;  %vm687_vm1 = vmmov (!%p159_p10), 0  }
  0x10   : > { %513 = vmatprep.mubr.msk.f32.mxu0 (!%p159_p10), %vm687_vm1, %v686_v6  ;;  %v520_v7 = vpack.c.bf16 (!%p159_p10), %v219_v5, %v218_v2  ;;  %v688_v8 = vmov (!%p159_p10), 0   ;;  %v220_v9 = vld [vmem:[%s895_s1 + $0x20] sm:$0xff] (!%p159_p10)  ;;  %v221_v10 = vld [vmem:[%s895_s1 + $0x28] sm:$0xff] (!%p159_p10)  ;;  %vm198_vm2 = vcmask (!%p159_p10), 1043456   ;;  %v222_v15 = vld [vmem:[%s895_s1 + $0x30] sm:$0xff] (!%p159_p10)  ;;  %vm214_vm3 = vcmask (!%p159_p10), 1040384  }
  0x11   : > { %518 = vmatpush3.bf16.msra.mxu0 (!%p159_p10), %v517_v4  ;;  %599 = vset.pattern.permute.xlu0 (!%p159_p10), %v688_v8  ;;  %v340_v11 = vld [vmem:[%s896_s2] sm:$0xf] (!%p159_p10)  ;;  %v523_v12 = vpack.c.bf16 (!%p159_p10), %v221_v10, %v220_v9  ;;  %v459_v14 = vld [vmem:[%s896_s2 + $0x4] sm:$0xf] (!%p159_p10)  ;;  %v223_v16 = vld [vmem:[%s895_s1 + $0x38] sm:$0xff] (!%p159_p10)  ;;  %vm308_vm4 = vcmask (!%p159_p10), 1041408  }
  0x12   : > { %519 = vmatprep.subr.bf16.mxu0 (!%p159_p10), %v685_v3  ;;  %600 = vset.pattern.permute.xlu1 (!%p159_p10), %v688_v8  ;;  %v526_v22 = vpack.c.bf16 (!%p159_p10), %v223_v16, %v222_v15  ;;  %v224_v25 = vld [vmem:[%s895_s1 + $0x40] sm:$0xff] (!%p159_p10)  ;;  %v225_v26 = vld [vmem:[%s895_s1 + $0x48] sm:$0xff] (!%p159_p10)  ;;  %v226_v31 = vld [vmem:[%s895_s1 + $0x50] sm:$0xff] (!%p159_p10)  ;;  %v316_v52 = vand.u32 (!%p159_p10), 127, %v315_v51  ;;  %v344_v6 = vshrl.u32 (!%p159_p10), %v315_v51, 7  ;;  %s181_s6 = sand.u32 (!%p159_p10), 1, %s667_s13  }
  0x13   : > { %355 = vperm.xlu1 (!%p159_p10), %600, %v340_v11   ;;  %v529_v28 = vpack.c.bf16 (!%p159_p10), %v225_v26, %v224_v25  ;;  %v227_v32 = vld [vmem:[%s895_s1 + $0x58] sm:$0xff] (!%p159_p10)  ;;  %v228_v36 = vld [vmem:[%s895_s1 + $0x60] sm:$0xff] (!%p159_p10)  ;;  %v229_v37 = vld [vmem:[%s895_s1 + $0x68] sm:$0xff] (!%p159_p10)  ;;  %s461_s8 = sshll.u32 (!%p159_p10), %s675_s15, 6  ;;  %s367_s21 = scalar_lea.sflag (!%p159_p10), [#allocation4], %s181_s6 }
  0x14   : > { %v532_v33 = vpack.c.bf16 (!%p159_p10), %v227_v32, %v226_v31  ;;  %v535_v38 = vpack.c.bf16 (!%p159_p10), %v229_v37, %v228_v36  ;;  %v230_v41 = vld [vmem:[%s895_s1 + $0x70] sm:$0xff] (!%p159_p10)  ;;  %v231_v42 = vld [vmem:[%s895_s1 + $0x78] sm:$0xff] (!%p159_p10)  ;;  %v320_v53 = vadd.s32 (!%p159_p10), 1, %v316_v52  ;;  %v350_v8 = vsub.s32 (!%p159_p10), 1, %v344_v6  ;;  %s847_s19 = scalar_lea.hbm (!%p159_p10), %s897_s3, %s461_s8 }
  0x15   : > { %521 = vmatpush3.bf16.msra.mxu0 (!%p159_p10), %v520_v7  ;;  %v538_v43 = vpack.c.bf16 (!%p159_p10), %v231_v42, %v230_v41  ;;  %v345_v7 = vsub.s32 (!%p159_p10), 0, %v344_v6 }
  0x16   : > { %s185_s7 = scalar_select %p184_p11, %s675_s15, 1  ;;  %522 = vmatprep.subr.bf16.mxu0 %v685_v3  ;;  %v232_v19 = vld [vmem:[#allocation2] sm:$0x3]  ;;  %v321_v54 = vmul.u32 4, %v320_v53 }
  0x17   : > { %235 = vperm.xlu0 %599, %v232_v19   ;;  %361 = vperm.xlu1 %600, %v459_v14   ;;  %s689_s15 = smov [#allocation3]  }
  0x18   : > { %s458_s18 = sshll.u32 %s185_s7, 2  ;;  %v322_v55 = vcvt.s32.f32 %v321_v54  ;;  %s457_s7 = sshll.u32 %s181_s6, 2 }
  0x19   : > { %s190_s27 = scalar_lea.vmem %s894_s0, %s458_s18  ;;  %524 = vmatpush3.bf16.msra.mxu0 %v523_v12  ;;  %s183_s9 = scalar_lea.vmem [#allocation3], %s457_s7 }
  0x1a   : > { %v794_v13 = vld [vmem:[%s190_s27] sm:$0xf]  ;;  %525 = vmatprep.subr.bf16.mxu0 %v685_v3  ;;  %601 = vrcp.f32 %v322_v55  ;;  %s381_s10 = sshll.u32 %s183_s9, 4  ;;  %s609_s26 = sshll.u32 %s689_s15, 4  ;;  %s849_s10 = int_to_ptr.vmem [resolvable:$true] %s381_s10  ;;  %s610_s26 = int_to_ptr.vmem [resolvable:$false] %s609_s26 }
  0x1b   : > { %v199_v17 = vsel %vm198_vm2, %v794_v13, 0.0  ;;  %v206_v18 = vmul.f32 %v794_v13, %v794_v13  ;;  %s605_s23 = scalar_lea.vmem %s849_s10, 64  ;;  %s611_s27 = scalar_lea.vmem %s610_s26, 128 }
  0x1c   : > { %v200_v20 = vrot.slane %v199_v17, 4  ;;  %p606_p12 = scmp.ne.s32.totalorder %s849_s10, %s605_s23  ;;  %p612_p1 = scmp.lt.s32.totalorder %s849_s10, %s610_s26 }
  0x1d   : > { %v207_v21 = vsel %vm198_vm2, %v206_v18, 0.0  ;;  %527 = vmatpush3.bf16.msra.mxu0 %v526_v22  ;;  %p613_p2 = scmp.lt.s32.totalorder %s611_s27, %s605_s23 }
  0x1e   : > { %v201_v23 = vadd.f32 %v200_v20, %v199_v17  ;;  %v208_v24 = vrot.slane %v207_v21, 4  ;;  %528 = vmatprep.subr.bf16.mxu0 %v685_v3  ;;  %p607_p13 = pnand %p606_p12, %p750_p4 }
  0x1f   : > { %p614_p3 = por %p613_p2, %p612_p1 }
  0x20   : > { %v209_v27 = vadd.f32 %v208_v24, %v207_v21  ;;  %v202_v29 = vrot.slane %v201_v23, 2  ;;  %p608_p0 = pneg %p607_p13 }
  0x21   : > { %530 = vmatpush3.bf16.msra.mxu0 %v529_v28 }
  0x22   : > { %v210_v30 = vrot.slane %v209_v27, 2  ;;  %v203_v34 = vadd.f32 %v202_v29, %v201_v23  ;;  %531 = vmatprep.subr.bf16.mxu0 %v685_v3  ;;  %p615_p5 = pnand %p614_p3, %p608_p0 }
  0x24   : > { %v211_v35 = vadd.f32 %v210_v30, %v209_v27  ;;  %v204_v39 = vrot.slane %v203_v34, 1  ;;  %v602_v56 = vpop.eup %601 }
  0x25   : > { %533 = vmatpush3.bf16.msra.mxu0 %v532_v33 }
  0x26   : > { %v212_v40 = vrot.slane %v211_v35, 1  ;;  %534 = vmatprep.subr.bf16.mxu0 %v685_v3  ;;  %v205_v44 = vadd.f32 %v204_v39, %v203_v34 }
  0x28   : > { %v213_v45 = vadd.f32 %v212_v40, %v211_v35 }
  0x29   : > { %536 = vmatpush3.bf16.msra.mxu0 %v535_v38 }
  0x2a   : > { %537 = vmatprep.subr.bf16.mxu0 %v685_v3  ;;  %v215_v46 = vsel %vm214_vm3, %v205_v44, %v213_v45 }
  0x2b   : > { %v309_v47 = vsel %vm308_vm4, %v215_v46, 0.0 }
  0x2d   : > { %539 = vmatpush3.bf16.msra.mxu0 %v538_v43 }
  0x30   : > { %514 = vmatmul.mubr.f32.vlgmr.msra.gmra.mrb[0].mxu0 %v215_v46 }
  0x36   : > { %310 = vadd.xlane.f32.xlu0 %v309_v47 }
  0x92   : > { %v356_v11 = vpop.permute.xlu1 %355 }
  0x96   : > { %v236_v48 = vpop.permute.xlu0 %235  ;;  %v362_v17 = vpop.permute.xlu1 %361 }
  0xc3   : > { %v311_v49 = vpop.xlane.xlu0 %310 }
  0xc4   : > { %v312_v50 = vadd.f32 %v311_v49, %v232_v19 }
  0xc6   : > { %314 = vst.msk [vmem:[#allocation2] sm:$0x3] %vm195_vm0, %v312_v50 }
 0x103   : > { %v304_v57 = vpop.f32.mrb[0].mxu0 }
 0x104   : > { %v305_v58 = vadd.f32 %v304_v57, %v236_v48  ;;  %v515_v59 = vpop.f32.mrb[1].mxu0 }
 0x106   : > { %v325_v60 = vmul.f32 %v602_v56, %v305_v58 }
 0x108   : > { %v326_v61 = vmul.f32 2.0, %v325_v60  ;;  %v333_v0 = vmul.f32 %v325_v60, %v325_v60  ;;  %v346_v9 = vrot.slane %v325_v60, %v345_v7 }
 0x10a   : > { %v327_v62 = vmul.f32 %v326_v61, %v305_v58  ;;  %v335_v3 = vrot.slane %v333_v0, 7  ;;  %v347_v12 = vsub.f32 %v794_v13, %v346_v9 }
 0x10c   : > { %v329_v63 = vrot.slane %v327_v62, 7 }
 0x10e   : > { %v331_v1 = vsub.f32 %v305_v58, %v329_v63 }
 0x110   : > { %v332_v2 = vmul.f32 %v602_v56, %v331_v1 }
 0x112   : > { %v337_v4 = vadd.f32 %v335_v3, %v332_v2 }
 0x114   : > { %v338_v5 = vadd.f32 1e-05, %v337_v4 }
 0x116   : > { %603 = vrsqrt.f32 %v338_v5 }
 0x120   : > { %v604_v10 = vpop.eup %603 }
 0x121   : > { %v351_v14 = vrot.slane %v604_v10, %v350_v8 }
 0x123   : > { %v352_v15 = vmul.f32 %v351_v14, %v347_v12 }
 0x125   : > { %v358_v16 = vmul.f32 %v356_v11, %v352_v15 }
 0x127   : > { %v364_v18 = vadd.f32 %v362_v17, %v358_v16 }
 0x129   : > { %365 = vst [vmem:[%s183_s9] sm:$0xf] %v364_v18 }
 0x12a   : > { %618 = shalt.err (!%p615_p5)
}
 0x12b   : > { %s619_s28 = scalar_lea.hbm %s847_s19, 64  ;;  %s623_s4 = scalar_lea.hbm %s897_s3, 128 }
 0x12c   : > { %p620_p6 = scmp.ne.s32.totalorder %s847_s19, %s619_s28  ;;  %p624_p10 = scmp.lt.u32.totalorder %s847_s19, %s897_s3 }
 0x12d   : > { %p625_p11 = scmp.lt.u32.totalorder %s623_s4, %s619_s28  ;;  %p627_p13 = scmp.lt.u32.totalorder %s619_s28, %s847_s19 }
 0x12e   : > { %p621_p7 = pnand %p620_p6, %p750_p4 }
 0x12f   : > { %p626_p12 = por %p625_p11, %p624_p10 }
 0x130   : > { %p622_p9 = pneg %p621_p7 }
 0x131   : > { %p628_p0 = por %p627_p13, %p626_p12 }
 0x133   : > { %p629_p1 = pnand %p628_p0, %p622_p9 }
 0x135   : > { %632 = shalt.err (!%p629_p1)
}
 0x136   : > { %540 = dma.vmem_to_hbm [thread:$0]  (%p750_p4), %s849_s10, 64, %s847_s19, %s367_s21  }
 0x137 PF: > { %p546_p2 = scmp.ge.s32.totalorder %s683_s17, 2  ;;  %s393_s7 = sand.u32 1, %s663_s12  }
 0x138   : > { %s394_s8 = scalar_lea.sflag [#allocation4], %s393_s7 }
 0x139   : > { %p543_p3 = pnand %p546_p2, %p757_p8 }
 0x13b   : > { %658 = dma.done.wait (!%p543_p3), %s394_s8, 64  }
 0x13c   : > { %660 = vsyncadd (!%p543_p3), %s394_s8, 4294967232  ;;  %s16_s17 = sadd.s32 1, %s683_s17   ;;  %s900_s12 = smov %s667_s13 }
 0x13d   : > { %p13_p5 = scmp.ge.s32.totalorder %s16_s17, 4   ;;  %s901_s13 = smov %s671_s14 }
 0x13e   : > { %s902_s14 = smov %s763_s25  ;;  %s903_s15 = smov %s679_s16 }
 0x13f   : > { %s904_s16 = smov %s906_s20  ;;  %15 = sbr.rel (!%p13_p5) target bundleno = 4 (0x4), region = 72 }
 0x146   :  { %399 = vsyncpa [#allocation4], 1 }
 0x147   :  { %401 = vsyncpa [#allocation4 + $0x1], 1 }

</bundles_post_ra>
